<compile_context>
chip_gen: v6e
topology: v6e:2x2x1
jax: 0.10.0
libtpu: 0.0.40
codegen_flags: <defaults>
</compile_context>

<pallas_src>
import functools
import math

import jax
import jax.numpy as jnp
from jax import lax
from jax.experimental import pallas as pl
from jax.experimental.pallas import tpu as pltpu


def _msa_kernel(x_ref, wqkv_ref, bqkv_ref, wo_ref, bo_ref, o_ref, qkv_sc,
                *, ep, tq, scale):
    # x_ref:    (1, S, Ep) — full sequence for the current batch element.
    # wqkv_ref: (Ep, 3*Ep), bqkv_ref: (1, 3*Ep)  (fused q|k|v, already W.T).
    # wo_ref:   (Ep, Ep),   bo_ref:   (1, Ep).
    # o_ref:    (1, TQ, Ep) — current query tile of the output.
    # qkv_sc:   (S, 3*Ep) VMEM scratch holding [Q | K | V] for this batch elem.
    qi = pl.program_id(1)

    # Project Q/K/V once per batch element (first query tile only), as a
    # single fused MXU pass, accumulate in f32, store in the input dtype.
    @pl.when(qi == 0)
    def _():
        x = x_ref[0]                                                  # (S, Ep)
        qkv = jnp.dot(x, wqkv_ref[...], preferred_element_type=jnp.float32)
        qkv = qkv + bqkv_ref[...]
        qkv_sc[...] = qkv.astype(qkv_sc.dtype)

    start = pl.multiple_of(qi * tq, tq)
    q = qkv_sc[pl.ds(start, tq), :][:, :ep]                           # (TQ, Ep)
    k = qkv_sc[:, ep:2 * ep]                                          # (S, Ep)
    v = qkv_sc[:, 2 * ep:3 * ep]                                      # (S, Ep)

    # q @ k^T without materializing a transpose (contract the embed dims).
    attn = lax.dot_general(
        q, k, (((1,), (1,)), ((), ())),
        preferred_element_type=jnp.float32) * scale                   # (TQ, S)

    # Numerically-stable softmax; statistics kept in f32.  The 1/denom is
    # folded into the PV result and uses the (otherwise idle) EUP recip.
    m = jnp.max(attn, axis=-1, keepdims=True)
    e = jnp.exp(attn - m)
    denom = jnp.sum(e, axis=-1, keepdims=True)
    inv = pl.reciprocal(denom, approx=True)                           # (TQ, 1)

    out = jnp.dot(e.astype(v.dtype), v,
                  preferred_element_type=jnp.float32) * inv           # (TQ, Ep)

    y = jnp.dot(out.astype(x_ref.dtype), wo_ref[...],
                preferred_element_type=jnp.float32) + bo_ref[...]     # (TQ, Ep)
    o_ref[0] = y.astype(o_ref.dtype)


def _round_up(n, m):
    return ((n + m - 1) // m) * m


def _pick_tq(s):
    """Largest query-tile size (multiple of 8) that divides S; else whole S."""
    for cand in (512, 256, 128, 64, 32, 16, 8):
        if s % cand == 0:
            return cand
    return s


def msa_forward(x, params):
    """x: (B, S, E).  params: (E, E) weights stored as W.T (in, out), (1, E) biases."""
    B, S, E = x.shape
    dtype = x.dtype
    Ep = _round_up(E, 128)          # lane-dense embed dim
    TQ = _pick_tq(S)
    QT = S // TQ
    scale = 1.0 / math.sqrt(E)      # uses the *unpadded* embed dim, as in torch

    # ---- host-side packing / padding (pure XLA ops, outside the kernel) ----
    def pad_w(w):                   # (E, E) -> (Ep, Ep), zero-padded
        return jnp.zeros((Ep, Ep), w.dtype).at[:E, :E].set(w)

    def pad_b(b):                   # (1, E) -> (1, Ep), zero-padded
        return jnp.zeros((1, Ep), b.dtype).at[:, :E].set(b)

    w_qkv = jnp.concatenate(
        [pad_w(params["wq"]), pad_w(params["wk"]), pad_w(params["wv"])], axis=1)
    b_qkv = jnp.concatenate(
        [pad_b(params["bq"]), pad_b(params["bk"]), pad_b(params["bv"])], axis=1)
    w_o = pad_w(params["wo"])
    b_o = pad_b(params["bo"])
    x_pad = x if Ep == E else jnp.pad(x, ((0, 0), (0, 0), (0, Ep - E)))

    kernel = functools.partial(_msa_kernel, ep=Ep, tq=TQ, scale=scale)

    flops = (2 * B * S * Ep * 3 * Ep          # fused QKV projection
             + 4 * B * S * S * Ep             # QK^T and PV
             + 2 * B * S * Ep * Ep)           # output projection
    itemsize = jnp.dtype(dtype).itemsize
    bytes_accessed = int(
        (x_pad.size + w_qkv.size + b_qkv.size + w_o.size + b_o.size
         + B * S * Ep) * itemsize)

    y_pad = pl.pallas_call(
        kernel,
        out_shape=jax.ShapeDtypeStruct((B, S, Ep), dtype),
        grid_spec=pltpu.PrefetchScalarGridSpec(
            num_scalar_prefetch=0,
            grid=(B, QT),
            in_specs=[
                # Full sequence per batch element; constant over the q-tile
                # axis so it is DMA'd only once per batch element.
                pl.BlockSpec((1, S, Ep), lambda b, q: (b, 0, 0)),
                # Loop-invariant weights/biases (constant block index => no
                # re-DMA across grid steps).
                pl.BlockSpec((Ep, 3 * Ep), lambda b, q: (0, 0)),
                pl.BlockSpec((1, 3 * Ep), lambda b, q: (0, 0)),
                pl.BlockSpec((Ep, Ep), lambda b, q: (0, 0)),
                pl.BlockSpec((1, Ep), lambda b, q: (0, 0)),
            ],
            out_specs=pl.BlockSpec((1, TQ, Ep), lambda b, q: (b, q, 0)),
            scratch_shapes=[pltpu.VMEM((S, 3 * Ep), dtype)],
        ),
        compiler_params=pltpu.CompilerParams(
            dimension_semantics=("parallel", "arbitrary"),
            vmem_limit_bytes=48 * 1024 * 1024),   # fits v7x's 64 MiB VMEM
        cost_estimate=pl.CostEstimate(
            flops=int(flops),
            transcendentals=int(B * S * S),
            bytes_accessed=bytes_accessed),
    )(x_pad, w_qkv, b_qkv, w_o, b_o)

    return y_pad[..., :E] if Ep != E else y_pad


def _init_params(key, embed_dim):
    """Deterministic init mimicking torch.nn.Linear default (uniform +/- 1/sqrt(in))."""
    bound = 1.0 / math.sqrt(embed_dim)
    keys = jax.random.split(key, 8)

    def lin(kw, kb):
        # Stored as (in, out) == torch W.T so the kernel does x @ W.
        w = jax.random.uniform(kw, (embed_dim, embed_dim), jnp.float32, -bound, bound)
        b = jax.random.uniform(kb, (1, embed_dim), jnp.float32, -bound, bound)
        return w, b

    wq, bq = lin(keys[0], keys[1])
    wk, bk = lin(keys[2], keys[3])
    wv, bv = lin(keys[4], keys[5])
    wo, bo = lin(keys[6], keys[7])
    return dict(wq=wq, bq=bq, wk=wk, bk=bk, wv=wv, bv=bv, wo=wo, bo=bo)


def _reference(x, p):
    """Pure-JAX reference of the PyTorch forward (mask=None)."""
    q = x @ p["wq"] + p["bq"]
    k = x @ p["wk"] + p["bk"]
    v = x @ p["wv"] + p["bv"]
    scale = 1.0 / math.sqrt(k.shape[-1])
    attn = jnp.einsum("bqe,bke->bqk", q, k) * scale
    scores = jax.nn.softmax(attn, axis=-1)
    out = jnp.einsum("bqk,bke->bqe", scores, v)
    return out @ p["wo"] + p["bo"]


if __name__ == "__main__":
    B, S, E = 2, 8, 32
    key = jax.random.PRNGKey(0)
    k_x, k_p = jax.random.split(key)
    x = jax.random.normal(k_x, (B, S, E), jnp.float32)
    params = _init_params(k_p, E)

    y = msa_forward(x, params)
    y = jax.block_until_ready(y)

    with jax.default_matmul_precision("highest"):
        y_ref = _reference(x, params)

    assert y.shape == (B, S, E)
    # 1e-3 tolerance: the softmax denominator uses the EUP approx reciprocal
    # (pl.reciprocal(..., approx=True)); everything else accumulates in f32.
    assert jnp.allclose(y, y_ref, atol=1e-3, rtol=1e-3), "mismatch vs reference"
    print("KERNEL_OK")
</pallas_src>

<mosaic_0001>
module attributes {stable_mosaic.version = 11 : i64} {
  func.func @_msa_kernel(%arg0: i32, %arg1: i32, %arg2: memref<1x8x128xf32, #tpu.memory_space<vmem>>, %arg3: memref<128x384xf32, #tpu.memory_space<vmem>>, %arg4: memref<1x384xf32, #tpu.memory_space<vmem>>, %arg5: memref<128x128xf32, #tpu.memory_space<vmem>>, %arg6: memref<1x128xf32, #tpu.memory_space<vmem>>, %arg7: memref<1x8x128xf32, #tpu.memory_space<vmem>>, %arg8: memref<8x384xf32, #tpu.memory_space<vmem>>) attributes {dimension_semantics = [#tpu.dimension_semantics<parallel>, #tpu.dimension_semantics<arbitrary>], iteration_bounds = array<i64: 2, 1>, scalar_prefetch = 0 : i64, scratch_operands = 1 : i64, tpu.core_type = #tpu.core_type<tc>, window_params = [{transform_indices = @transform_0, window_bounds = array<i64: 1, 8, 128>}, {pipeline_mode = #tpu.pipeline_mode<synchronous>, transform_indices = @transform_1, window_bounds = array<i64: 128, 384>}, {pipeline_mode = #tpu.pipeline_mode<synchronous>, transform_indices = @transform_2, window_bounds = array<i64: 1, 384>}, {pipeline_mode = #tpu.pipeline_mode<synchronous>, transform_indices = @transform_3, window_bounds = array<i64: 128, 128>}, {pipeline_mode = #tpu.pipeline_mode<synchronous>, transform_indices = @transform_4, window_bounds = array<i64: 1, 128>}, {transform_indices = @transform_5, window_bounds = array<i64: 1, 8, 128>}]} {
    %c0_i32 = arith.constant 0 : i32
    %0 = arith.cmpi eq, %arg1, %c0_i32 : i32
    %1 = arith.extui %0 : i1 to i32
    %c0_i32_0 = arith.constant 0 : i32
    %2 = arith.cmpi ne, %1, %c0_i32_0 : i32
    scf.if %2 {
      %c0_15 = arith.constant 0 : index
      %c0_16 = arith.constant 0 : index
      %c0_17 = arith.constant 0 : index
      %32 = vector.load %arg2[%c0_15, %c0_16, %c0_17] : memref<1x8x128xf32, #tpu.memory_space<vmem>>, vector<1x8x128xf32>
      %33 = vector.shape_cast %32 : vector<1x8x128xf32> to vector<8x128xf32>
      %c0_18 = arith.constant 0 : index
      %c0_19 = arith.constant 0 : index
      %34 = vector.load %arg3[%c0_18, %c0_19] : memref<128x384xf32, #tpu.memory_space<vmem>>, vector<128x384xf32>
      %cst_20 = arith.constant dense<0.000000e+00> : vector<8x384xf32>
      %35 = tpu.matmul %33, %34, %cst_20 {dimension_numbers = #tpu.dot_dimension_numbers<[1], [0], [0], [1], [0, 0, 1, 1], [], []>} : vector<8x128xf32>, vector<128x384xf32>, vector<8x384xf32> -> vector<8x384xf32>
      %c0_21 = arith.constant 0 : index
      %c0_22 = arith.constant 0 : index
      %36 = vector.load %arg4[%c0_21, %c0_22] : memref<1x384xf32, #tpu.memory_space<vmem>>, vector<1x384xf32>
      %37 = vector.broadcast %36 : vector<1x384xf32> to vector<8x384xf32>
      %38 = arith.addf %35, %37 : vector<8x384xf32>
      %c0_23 = arith.constant 0 : index
      %c0_24 = arith.constant 0 : index
      %39 = vector.load %arg8[%c0_23, %c0_24] : memref<8x384xf32, #tpu.memory_space<vmem>>, vector<8x384xf32>
      tpu.vector_store %arg8[%c0_23, %c0_24], %38 {strides = array<i32>} : memref<8x384xf32, #tpu.memory_space<vmem>>, vector<8x384xf32>,
    } else {
    }
    %c8_i32 = arith.constant 8 : i32
    %3 = arith.muli %arg1, %c8_i32 : i32
    %4 = tpu.assume_multiple %3, 8 : i32
    %5 = arith.index_cast %4 : i32 to index
    %c0 = arith.constant 0 : index
    %6 = vector.load %arg8[%5, %c0] : memref<8x384xf32, #tpu.memory_space<vmem>>, vector<8x384xf32>
    %7 = vector.extract_strided_slice %6 {offsets = [0, 0], sizes = [8, 128], strides = [1, 1]} : vector<8x384xf32> to vector<8x128xf32>
    %c0_1 = arith.constant 0 : index
    %c128 = arith.constant 128 : index
    %8 = vector.load %arg8[%c0_1, %c128] : memref<8x384xf32, #tpu.memory_space<vmem>>, vector<8x128xf32>
    %c0_2 = arith.constant 0 : index
    %c256 = arith.constant 256 : index
    %9 = vector.load %arg8[%c0_2, %c256] : memref<8x384xf32, #tpu.memory_space<vmem>>, vector<8x128xf32>
    %cst = arith.constant dense<0.000000e+00> : vector<8x8xf32>
    %10 = tpu.matmul %7, %8, %cst {dimension_numbers = #tpu.dot_dimension_numbers<[1], [1], [0], [0], [0, 0, 1, 0], [], []>} : vector<8x128xf32>, vector<8x128xf32>, vector<8x8xf32> -> vector<8x8xf32>
    %cst_3 = arith.constant 0.176776692 : f32
    %11 = vector.broadcast %cst_3 : f32 to vector<8x8xf32>
    %12 = arith.mulf %10, %11 : vector<8x8xf32>
    %cst_4 = arith.constant dense<0xFF800000> : vector<8xf32>
    %13 = vector.multi_reduction <maximumf>, %12, %cst_4 [1] : vector<8x8xf32> to vector<8xf32>
    %14 = vector.shape_cast %13 : vector<8xf32> to vector<8x1xf32>
    %15 = vector.broadcast %14 : vector<8x1xf32> to vector<8x8xf32>
    %16 = arith.subf %12, %15 : vector<8x8xf32>
    %17 = math.exp %16 : vector<8x8xf32>
    %cst_5 = arith.constant dense<0.000000e+00> : vector<8xf32>
    %18 = vector.multi_reduction <add>, %17, %cst_5 [1] : vector<8x8xf32> to vector<8xf32>
    %19 = vector.shape_cast %18 : vector<8xf32> to vector<8x1xf32>
    %20 = tpu.reciprocal %19 {approx = true} : vector<8x1xf32> -> vector<8x1xf32>
    %cst_6 = arith.constant dense<0.000000e+00> : vector<8x128xf32>
    %21 = tpu.matmul %17, %9, %cst_6 {dimension_numbers = #tpu.dot_dimension_numbers<[1], [0], [0], [1], [0, 0, 1, 1], [], []>} : vector<8x8xf32>, vector<8x128xf32>, vector<8x128xf32> -> vector<8x128xf32>
    %22 = vector.broadcast %20 : vector<8x1xf32> to vector<8x128xf32>
    %23 = arith.mulf %21, %22 : vector<8x128xf32>
    %c0_7 = arith.constant 0 : index
    %c0_8 = arith.constant 0 : index
    %24 = vector.load %arg5[%c0_7, %c0_8] : memref<128x128xf32, #tpu.memory_space<vmem>>, vector<128x128xf32>
    %cst_9 = arith.constant dense<0.000000e+00> : vector<8x128xf32>
    %25 = tpu.matmul %23, %24, %cst_9 {dimension_numbers = #tpu.dot_dimension_numbers<[1], [0], [0], [1], [0, 0, 1, 1], [], []>} : vector<8x128xf32>, vector<128x128xf32>, vector<8x128xf32> -> vector<8x128xf32>
    %c0_10 = arith.constant 0 : index
    %c0_11 = arith.constant 0 : index
    %26 = vector.load %arg6[%c0_10, %c0_11] : memref<1x128xf32, #tpu.memory_space<vmem>>, vector<1x128xf32>
    %27 = vector.broadcast %26 : vector<1x128xf32> to vector<8x128xf32>
    %28 = arith.addf %25, %27 : vector<8x128xf32>
    %c0_12 = arith.constant 0 : index
    %c0_13 = arith.constant 0 : index
    %c0_14 = arith.constant 0 : index
    %29 = vector.load %arg7[%c0_12, %c0_13, %c0_14] : memref<1x8x128xf32, #tpu.memory_space<vmem>>, vector<1x8x128xf32>
    %30 = vector.shape_cast %29 : vector<1x8x128xf32> to vector<8x128xf32>
    %31 = vector.shape_cast %28 : vector<8x128xf32> to vector<1x8x128xf32>
    tpu.vector_store %arg7[%c0_12, %c0_13, %c0_14], %31 {strides = array<i32>} : memref<1x8x128xf32, #tpu.memory_space<vmem>>, vector<1x8x128xf32>,
    return
  }
  func.func @transform_0(%arg0: i32, %arg1: i32) -> (i32, i32, i32) {
    %c0_i32 = arith.constant 0 : i32
    %c0_i32_0 = arith.constant 0 : i32
    %c0_i32_1 = arith.constant 0 : i32
    return %arg0, %c0_i32, %c0_i32_0 : i32, i32, i32
  }
  func.func @transform_1(%arg0: i32, %arg1: i32) -> (i32, i32) {
    %c0_i32 = arith.constant 0 : i32
    %c0_i32_0 = arith.constant 0 : i32
    %c0_i32_1 = arith.constant 0 : i32
    return %c0_i32, %c0_i32_0 : i32, i32
  }
  func.func @transform_2(%arg0: i32, %arg1: i32) -> (i32, i32) {
    %c0_i32 = arith.constant 0 : i32
    %c0_i32_0 = arith.constant 0 : i32
    %c0_i32_1 = arith.constant 0 : i32
    return %c0_i32, %c0_i32_0 : i32, i32
  }
  func.func @transform_3(%arg0: i32, %arg1: i32) -> (i32, i32) {
    %c0_i32 = arith.constant 0 : i32
    %c0_i32_0 = arith.constant 0 : i32
    %c0_i32_1 = arith.constant 0 : i32
    return %c0_i32, %c0_i32_0 : i32, i32
  }
  func.func @transform_4(%arg0: i32, %arg1: i32) -> (i32, i32) {
    %c0_i32 = arith.constant 0 : i32
    %c0_i32_0 = arith.constant 0 : i32
    %c0_i32_1 = arith.constant 0 : i32
    return %c0_i32, %c0_i32_0 : i32, i32
  }
  func.func @transform_5(%arg0: i32, %arg1: i32) -> (i32, i32, i32) {
    %c0_i32 = arith.constant 0 : i32
    %c0_i32_0 = arith.constant 0 : i32
    return %arg0, %arg1, %c0_i32 : i32, i32, i32
  }
}

</mosaic_0001>

<bundles_post_ra>
// kernel: tpu_custom_call.1
= control target key start
LH: loop header
LB: loop body
LE: loop exit
PB: predicated region body
PF: predicated region fallthrough
CT: control target
= control target key end

     0   :  { %s1543_s0 = inlined_call_operand.hbm [shape: f32[2,8,128], index: 0, kind: input, shape index: {}]   ;;  %s1544_s1 = inlined_call_operand.hbm [shape: f32[128,384], index: 1, kind: input, shape index: {}]   ;;  %s1545_s2 = inlined_call_operand.vmem [shape: f32[1,384], index: 2, kind: input, shape index: {}]   ;;  %s1546_s3 = inlined_call_operand.hbm [shape: f32[128,128], index: 3, kind: input, shape index: {}]   ;;  %s1547_s4 = inlined_call_operand.vmem [shape: f32[1,128], index: 4, kind: input, shape index: {}]   ;;  %s1548_s5 = inlined_call_operand.hbm [shape: f32[2,8,128], index: 5, kind: output, shape index: {}]  }
   0x1   :  { %1552 = sst [smem:[#allocation13_spill]] %s1544_s1 }
   0x2   :  { %10 = vsyncpa [#allocation4], 0 }
   0x3   :  { %12 = vsyncpa [#allocation4 + $0x1], 0 }
   0x4   :  { %13 = vsyncpa [#allocation7], 0 }
   0x5   :  { %14 = vsyncpa [#allocation5], 0 }
   0x6   :  { %16 = vsyncpa [#allocation5 + $0x1], 0  ;;  %s1307_s18 = smov 0   ;;  %s1309_s19 = smov 0  }
   0x7   :  { %s1311_s20 = smov 0   ;;  %s1313_s21 = smov 0  }
   0x8   :  { %s1315_s22 = smov 0   ;;  %s1317_s23 = smov 0  }
   0x9 LB: > { %s871_s24 = sadd.s32 4294967295, %s1265_s23   ;;  %s872_s25 = sadd.s32 4294967294, %s1265_s23   ;;  %s1265_s23 = sphi %s1317_s23, %s22_s23   ;;  %s1261_s22 = sphi %s1315_s22, %s1570_s22   ;;  %s1257_s21 = sphi %s1313_s21, %s1569_s21   ;;  %s1253_s20 = sphi %s1311_s20, %s1568_s20   ;;  %s1249_s19 = sphi %s1309_s19, %s1567_s19   ;;  %s1245_s18 = sphi %s1307_s18, %s1566_s18  }
   0xa   : > { %p54_p0 = scmp.ne.s32.totalorder %s1249_s19, %s1245_s18  ;;  %p1341_p1 = scmp.eq.s32.totalorder %s871_s24, 0 }
   0xb   : > { %p1345_p2 = scmp.eq.s32.totalorder %s871_s24, 1  ;;  %p170_p3 = scmp.eq.s32.totalorder %s872_s25, 1 }
   0xc   : > { %s1553_s26 = scalar_select %p1341_p1, 1, 0 }
   0xd   : > { %p1351_p4 = por %p1341_p1, %p54_p0  ;;  %p873_p5 = scmp.ge.s32.totalorder %s1265_s23, 1 }
   0xe   : > { %p1356_p6 = por %p170_p3, %p54_p0  ;;  %p177_p7 = scmp.lt.s32.totalorder %s1265_s23, 3 }
   0xf   : > { %s1555_s28 = scalar_select %p1351_p4, 1, 0 }
  0x10   : > { %s1556_s29 = scalar_select %p1356_p6, 1, 0 }
  0x11   : > { %p1361_p8 = pnand %p873_p5, %p177_p7  ;;  %s1267_s6 = smov [#allocation6]  }
  0x12   : > { %s189_s7 = sshll.u32 %s1267_s6, 4  ;;  %s1268_s9 = smov [#allocation8]   ;;  %s190_s7 = int_to_ptr.vmem [resolvable:$true] %s189_s7 }
  0x13   : > { %p1020_p9 = pneg %p1361_p8  ;;  %s205_s10 = sshll.u32 %s1268_s9, 4  ;;  %s206_s10 = int_to_ptr.vmem [resolvable:$true] %s205_s10 }
  0x14   : > { %s1112_s11 = scalar_lea.vmem %s190_s7, 6144  ;;  %p1120_p5 = scmp.lt.s32.totalorder %s190_s7, %s190_s7 }
  0x15   : > { %p1370_p11 = pnand %p1020_p9, %p1341_p1  ;;  %p1113_p13 = scmp.ne.s32.totalorder %s190_s7, %s1112_s11 }
  0x16   : > { %p1121_p7 = scmp.lt.s32.totalorder %s1112_s11, %s1112_s11 }
  0x17   : > { %p1103_p12 = pneg %p1370_p11 }
  0x18   : > { %p1122_p10 = por %p1121_p7, %p1120_p5 }
  0x19   : > { %p1115_p0 = pnand %p1113_p13, %p1103_p12 }
  0x1b   : > { %p1116_p3 = pneg %p1115_p0 }
  0x1d   : > { %p1123_p9 = pnand %p1122_p10, %p1116_p3 }
  0x1f   : > { %1126 = shalt.err (!%p1123_p9)
}
  0x20   : > { %s1269_s12 = smov 384   ;;  %s1270_s13 = smov 24  }
  0x21   : > { %s1559_s1 = sld [smem:[#allocation13_spill]]  ;;  %s1138_s16 = scalar_lea.vmem %s206_s10, 2048 }
  0x22   : > { %p1139_p6 = scmp.ne.s32.totalorder %s206_s10, %s1138_s16  ;;  %p1146_p1 = scmp.lt.s32.totalorder %s206_s10, %s206_s10 }
  0x23   : > { %p1147_p4 = scmp.lt.s32.totalorder %s1138_s16, %s1138_s16 }
  0x24   : > { %p1141_p13 = pnand %p1139_p6, %p1103_p12 }
  0x25   : > { %p1148_p5 = por %p1147_p4, %p1146_p1 }
  0x26   : > { %p1142_p0 = pneg %p1141_p13 }
  0x27   : > { %1023 = dma.hbm_to_vmem [thread:$0]  (!%p1370_p11), %s1559_s1, 6144, %s190_s7, [#allocation7], %s1269_s12, %s1269_s12, %s1270_s13  }
  0x28   : > { %p1149_p10 = pnand %p1148_p5, %p1142_p0 }
  0x2a   : > { %1152 = shalt.err (!%p1149_p10)
}
  0x2b   : > { %s1271_s17 = smov 128   ;;  %s1272_s24 = smov 8  }
  0x2c   : > { %1026 = dma.hbm_to_vmem [thread:$0]  (!%p1370_p11), %s1546_s3, 2048, %s206_s10, [#allocation7], %s1271_s17, %s1271_s17, %s1272_s24  }
  0x2d   : > { %s34_s7 = sadd.s32 1, %s1261_s22  ;;  %s41_s9 = sadd.s32 1, %s1253_s20 }
  0x2e   : > { %p36_p1 = scmp.ge.s32.totalorder %s34_s7, 2  ;;  %p48_p4 = scmp.ne.s32.totalorder %s1253_s20, %s1249_s19 }
  0x2f   : > { %p49_p6 = scmp.eq.s32.totalorder %s1265_s23, 0  ;;  %p1037_p12 = scmp.lt.s32.totalorder %s1265_s23, 2 }
  0x30   : > { %s1572_s7 = smov (%p36_p1, %s34_s7), 0  ;;  %p1402_p7 = por %p1345_p2, %p48_p4 }
  0x31   : > { %p50_p3 = por %p49_p6, %p48_p4  ;;  %s38_s8 = ssub.s32 %s1261_s22, %s1572_s7 }
  0x32   : > { %s222_s12 = sand.u32 1, %s1253_s20   ;;  %p39_p9 = scmp.eq.s32.totalorder %s38_s8, 0 }
  0x33   : > { %s877_s10 = sshll.u32 %s222_s12, 3  ;;  %s878_s13 = sshll.u32 %s1261_s22, 7 }
  0x34   : > { %s1411_s14 = scalar_select %p39_p9, %s1253_s20, %s41_s9  }
  0x35   : > { %s231_s17 = scalar_lea.hbm %s1543_s0, %s878_s13  ;;  %s226_s24 = scalar_lea.vmem [#allocation3], %s877_s10 }
  0x36   : > { %s233_s25 = sshll.u32 %s226_s24, 4  ;;  %p1418_p11 = pnand %p1037_p12, %p50_p3  ;;  %s234_s25 = int_to_ptr.vmem [resolvable:$true] %s233_s25 }
  0x37   : > { %s223_s6 = scalar_lea.sflag [#allocation4], %s222_s12  ;;  %s1166_s8 = scalar_lea.vmem %s234_s25, 128 }
  0x38   : > { %p1155_p2 = pneg %p1418_p11  ;;  %p1167_p13 = scmp.ne.s32.totalorder %s234_s25, %s1166_s8 }
  0x39   : > { %s1273_s9 = smov [#allocation3]  }
  0x3a   : > { %p1169_p0 = pnand %p1167_p13, %p1155_p2  ;;  %s1171_s1 = sshll.u32 %s1273_s9, 4  ;;  %s1172_s1 = int_to_ptr.vmem [resolvable:$false] %s1171_s1 }
  0x3b   : > { %s1173_s13 = scalar_lea.vmem %s1172_s1, 256  ;;  %p1174_p10 = scmp.lt.s32.totalorder %s234_s25, %s1172_s1 }
  0x3c   : > { %p1170_p5 = pneg %p1169_p0  ;;  %p1175_p1 = scmp.lt.s32.totalorder %s1173_s13, %s1166_s8 }
  0x3e   : > { %p1176_p4 = por %p1175_p1, %p1174_p10 }
  0x40   : > { %p1177_p6 = pnand %p1176_p4, %p1170_p5 }
  0x42   : > { %1180 = shalt.err (!%p1177_p6)
}
  0x43   : > { %1030 = dma.hbm_to_vmem [thread:$0]  (!%p1418_p11), %s231_s17, 128, %s234_s25, %s223_s6  }
  0x44   : > { %242 = sbr.rel (%p1361_p8) target bundleno = 1066 (0x42a), region = 40  ;;  %s1429_s12 = sand.u32 (!%p1361_p8), 1, %s1249_s19  }
  0x45   : > { %s880_s10 = sshll.u32 (!%p1361_p8), %s1429_s12, 3  ;;  %s245_s15 = scalar_lea.sflag (!%p1361_p8), [#allocation4], %s1429_s12 }
  0x46   : > { %s1435_s1 = scalar_lea.vmem (!%p1361_p8), [#allocation3], %s880_s10  ;;  %p1562_p12 = scmp.ne.s32.totalorder (!%p1361_p8), %s1555_s28, 0 }
  0x49   : > { %1232 = dma.done.wait (%p1562_p12), %s245_s15, 128  }
  0x4a   : > { %1234 = vsyncadd (%p1562_p12), %s245_s15, 4294967168  ;;  %p1563_p3 = scmp.ne.s32.totalorder %s1553_s26, 0 }
  0x4c   : > { %1236 = dma.done.wait (%p1563_p3), [#allocation7], 8192  }
  0x4d   : > { %1238 = vsyncadd (%p1563_p3), [#allocation7], 4294959104  ;;  %v1274_v0 = vmov 0.0   ;;  %v334_v1 = vld [vmem:[#allocation6 + $0x170] sm:$0xff]  ;;  %v333_v2 = vld [vmem:[#allocation6 + $0x168] sm:$0xff]  ;;  %vm1275_vm0 = vmmov 0   ;;  %v338_v50 = vlaneseq }
  0x4e   : > { %417 = vmatprep.mubr.f32.mxu0 %v1274_v0  ;;  %928 = vmatprep.subr.mxu1 %v1274_v0  ;;  %v331_v3 = vld [vmem:[#allocation6 + $0x158] sm:$0xff]  ;;  %v330_v4 = vld [vmem:[#allocation6 + $0x150] sm:$0xff]  ;;  %v328_v5 = vld [vmem:[#allocation6 + $0x140] sm:$0xff]  ;;  %vm577_vm1 = vcmask 64512   ;;  %s887_s17 = sshll.u32 %s1257_s21, 7  ;;  %s282_s24 = scalar_lea.vmem [#allocation9], %s880_s10 }
  0x4f   : > { %353 = vmatprep.subr.mxu0 %v334_v1  ;;  %v327_v6 = vld [vmem:[#allocation6 + $0x138] sm:$0xff]  ;;  %v325_v7 = vld [vmem:[#allocation6 + $0x128] sm:$0xff]  ;;  %v324_v8 = vld [vmem:[#allocation6 + $0x120] sm:$0xff]  ;;  %960 = vmatprep.mubr.msk.f32.mxu1 %vm1275_vm0, %v1274_v0  ;;  %v339_v51 = vshrl.u32 %v338_v50, 7  ;;  %s771_s25 = sshll.u32 %s282_s24, 4  ;;  %s1501_s8 = scalar_lea.hbm %s1548_s5, %s887_s17  ;;  %s772_s25 = int_to_ptr.vmem [resolvable:$true] %s771_s25 }
  0x50   : > { %354 = vmatpush1.msra.mxu0 %v333_v2  ;;  %v322_v9 = vld [vmem:[#allocation6 + $0x110] sm:$0xff]  ;;  %v321_v10 = vld [vmem:[#allocation6 + $0x108] sm:$0xff]  ;;  %v319_v11 = vld [vmem:[#allocation6 + $0xf8] sm:$0xff]  ;;  %s757_s9 = scalar_lea.sflag [#allocation5], %s1429_s12  ;;  %s1181_s13 = scalar_lea.vmem %s772_s25, 128 }
  0x51   : > { %355 = vmatprep.subr.mxu0 %v331_v3  ;;  %v318_v12 = vld [vmem:[#allocation6 + $0xf0] sm:$0xff]  ;;  %v316_v13 = vld [vmem:[#allocation6 + $0xe0] sm:$0xff]  ;;  %v315_v14 = vld [vmem:[#allocation6 + $0xd8] sm:$0xff]  ;;  %v348_v52 = vsub.s32 2, %v339_v51  ;;  %v344_v55 = vsub.s32 1, %v339_v51  ;;  %v340_v56 = vsub.s32 0, %v339_v51  ;;  %p1182_p8 = scmp.ne.s32.totalorder %s772_s25, %s1181_s13 }
  0x52   : > { %356 = vmatpush1.msra.mxu0 %v330_v4  ;;  %v335_v15 = vld [vmem:[#allocation6 + $0x178] sm:$0xff]  ;;  %v332_v16 = vld [vmem:[#allocation6 + $0x160] sm:$0xff]  ;;  %v313_v17 = vld [vmem:[#allocation6 + $0xc8] sm:$0xff]  ;;  %s1276_s21 = smov [#allocation9]  }
  0x53   : > { %357 = vmatprep.subr.mxu0 %v328_v5  ;;  %929 = vmatpush3.msra.mxu1 %v335_v15  ;;  %v312_v18 = vld [vmem:[#allocation6 + $0xc0] sm:$0xff]  ;;  %v329_v19 = vld [vmem:[#allocation6 + $0x148] sm:$0xff]  ;;  %v310_v20 = vld [vmem:[#allocation6 + $0xb0] sm:$0xff]  ;;  %p1183_p9 = pnand %p1182_p8, %p1402_p7  ;;  %s1185_s15 = sshll.u32 %s1276_s21, 4  ;;  %s1186_s15 = int_to_ptr.vmem [resolvable:$false] %s1185_s15 }
  0x54   : > { %358 = vmatpush1.msra.mxu0 %v327_v6  ;;  %930 = vmatprep.subr.mxu1 %v1274_v0  ;;  %v309_v21 = vld [vmem:[#allocation6 + $0xa8] sm:$0xff]  ;;  %v326_v22 = vld [vmem:[#allocation6 + $0x130] sm:$0xff]  ;;  %v307_v23 = vld [vmem:[#allocation6 + $0x98] sm:$0xff]  ;;  %s1187_s10 = scalar_lea.vmem %s1186_s15, 256  ;;  %p1188_p2 = scmp.lt.s32.totalorder %s772_s25, %s1186_s15 }
  0x55   : > { %359 = vmatprep.subr.mxu0 %v325_v7  ;;  %931 = vmatpush3.msra.mxu1 %v332_v16  ;;  %v306_v24 = vld [vmem:[#allocation6 + $0x90] sm:$0xff]  ;;  %v323_v25 = vld [vmem:[#allocation6 + $0x118] sm:$0xff]  ;;  %v304_v26 = vld [vmem:[#allocation6 + $0x80] sm:$0xff]  ;;  %p1184_p11 = pneg %p1183_p9  ;;  %p1189_p13 = scmp.lt.s32.totalorder %s1187_s10, %s1181_s13 }
  0x56   : > { %360 = vmatpush1.msra.mxu0 %v324_v8  ;;  %932 = vmatprep.subr.mxu1 %v1274_v0  ;;  %v303_v27 = vld [vmem:[#allocation6 + $0x78] sm:$0xff]  ;;  %v320_v28 = vld [vmem:[#allocation6 + $0x100] sm:$0xff]  ;;  %v301_v29 = vld [vmem:[#allocation6 + $0x68] sm:$0xff] }
  0x57   : > { %361 = vmatprep.subr.mxu0 %v322_v9  ;;  %933 = vmatpush3.msra.mxu1 %v329_v19  ;;  %v300_v30 = vld [vmem:[#allocation6 + $0x60] sm:$0xff]  ;;  %v317_v31 = vld [vmem:[#allocation6 + $0xe8] sm:$0xff]  ;;  %v298_v32 = vld [vmem:[#allocation6 + $0x50] sm:$0xff]  ;;  %p1190_p0 = por %p1189_p13, %p1188_p2 }
  0x58   : > { %362 = vmatpush1.msra.mxu0 %v321_v10  ;;  %934 = vmatprep.subr.mxu1 %v1274_v0  ;;  %v297_v33 = vld [vmem:[#allocation6 + $0x48] sm:$0xff]  ;;  %v314_v34 = vld [vmem:[#allocation6 + $0xd0] sm:$0xff]  ;;  %v295_v35 = vld [vmem:[#allocation6 + $0x38] sm:$0xff] }
  0x59   : > { %363 = vmatprep.subr.mxu0 %v319_v11  ;;  %935 = vmatpush3.msra.mxu1 %v326_v22  ;;  %v294_v36 = vld [vmem:[#allocation6 + $0x30] sm:$0xff]  ;;  %v311_v37 = vld [vmem:[#allocation6 + $0xb8] sm:$0xff]  ;;  %v292_v38 = vld [vmem:[#allocation6 + $0x20] sm:$0xff]  ;;  %p1191_p5 = pnand %p1190_p0, %p1184_p11 }
  0x5a   : > { %364 = vmatpush1.msra.mxu0 %v318_v12  ;;  %936 = vmatprep.subr.mxu1 %v1274_v0  ;;  %v291_v39 = vld [vmem:[#allocation6 + $0x18] sm:$0xff]  ;;  %v308_v40 = vld [vmem:[#allocation6 + $0xa0] sm:$0xff]  ;;  %v289_v41 = vld [vmem:[#allocation6 + $0x8] sm:$0xff] }
  0x5b   : > { %365 = vmatprep.subr.mxu0 %v316_v13  ;;  %937 = vmatpush3.msra.mxu1 %v323_v25  ;;  %v288_v42 = vld [vmem:[#allocation6] sm:$0xff]  ;;  %v305_v43 = vld [vmem:[#allocation6 + $0x88] sm:$0xff]  ;;  %v287_v44 = vld [vmem:[%s1435_s1] sm:$0xff] }
  0x5c   : > { %366 = vmatpush1.msra.mxu0 %v315_v14  ;;  %938 = vmatprep.subr.mxu1 %v1274_v0  ;;  %v302_v45 = vld [vmem:[#allocation6 + $0x70] sm:$0xff]  ;;  %v299_v46 = vld [vmem:[#allocation6 + $0x58] sm:$0xff]  ;;  %v296_v47 = vld [vmem:[#allocation6 + $0x40] sm:$0xff] }
  0x5d   : > { %367 = vmatprep.subr.mxu0 %v313_v17  ;;  %939 = vmatpush3.msra.mxu1 %v320_v28  ;;  %v293_v48 = vld [vmem:[#allocation6 + $0x28] sm:$0xff]  ;;  %v290_v49 = vld [vmem:[#allocation6 + $0x10] sm:$0xff]  ;;  %v677_v12 = vld [vmem:[#allocation8 + $0x78] sm:$0xff] }
  0x5e   : > { %368 = vmatpush1.msra.mxu0 %v312_v18  ;;  %940 = vmatprep.subr.mxu1 %v1274_v0  ;;  %v336_v53 = vld [vmem:[%s1545_s2] sm:$0x7]  ;;  %v675_v14 = vld [vmem:[#allocation8 + $0x68] sm:$0xff]  ;;  %v674_v15 = vld [vmem:[#allocation8 + $0x60] sm:$0xff] }
  0x5f   : > { %369 = vmatprep.subr.mxu0 %v310_v20  ;;  %941 = vmatpush3.msra.mxu1 %v317_v31  ;;  %v349_v54 = vrot.slane %v336_v53, %v348_v52  ;;  %v345_v57 = vrot.slane %v336_v53, %v344_v55  ;;  %v341_v59 = vrot.slane %v336_v53, %v340_v56  ;;  %v676_v13 = vld [vmem:[#allocation8 + $0x70] sm:$0xff]  ;;  %v673_v16 = vld [vmem:[#allocation8 + $0x58] sm:$0xff]  ;;  %v671_v18 = vld [vmem:[#allocation8 + $0x48] sm:$0xff] }
  0x60   : > { %370 = vmatpush1.msra.mxu0 %v309_v21  ;;  %942 = vmatprep.subr.mxu1 %v1274_v0  ;;  %v672_v17 = vld [vmem:[#allocation8 + $0x50] sm:$0xff]  ;;  %v670_v19 = vld [vmem:[#allocation8 + $0x40] sm:$0xff]  ;;  %v669_v20 = vld [vmem:[#allocation8 + $0x38] sm:$0xff] }
  0x61   : > { %371 = vmatprep.subr.mxu0 %v307_v23  ;;  %943 = vmatpush3.msra.mxu1 %v314_v34  ;;  %v668_v21 = vld [vmem:[#allocation8 + $0x30] sm:$0xff]  ;;  %v667_v22 = vld [vmem:[#allocation8 + $0x28] sm:$0xff]  ;;  %v666_v23 = vld [vmem:[#allocation8 + $0x20] sm:$0xff] }
  0x62   : > { %372 = vmatpush1.msra.mxu0 %v306_v24  ;;  %944 = vmatprep.subr.mxu1 %v1274_v0  ;;  %v665_v24 = vld [vmem:[#allocation8 + $0x18] sm:$0xff]  ;;  %v664_v25 = vld [vmem:[#allocation8 + $0x10] sm:$0xff] }
  0x63   : > { %373 = vmatprep.subr.mxu0 %v304_v26  ;;  %945 = vmatpush3.msra.mxu1 %v311_v37  ;;  %v663_v26 = vld [vmem:[#allocation8 + $0x8] sm:$0xff] }
  0x64   : > { %374 = vmatpush1.msra.mxu0 %v303_v27  ;;  %946 = vmatprep.subr.mxu1 %v1274_v0  ;;  %v662_v27 = vld [vmem:[#allocation8] sm:$0xff] }
  0x65   : > { %375 = vmatprep.subr.mxu0 %v301_v29  ;;  %947 = vmatpush3.msra.mxu1 %v308_v40 }
  0x66   : > { %376 = vmatpush1.msra.mxu0 %v300_v30  ;;  %948 = vmatprep.subr.mxu1 %v1274_v0 }
  0x67   : > { %377 = vmatprep.subr.mxu0 %v298_v32  ;;  %949 = vmatpush3.msra.mxu1 %v305_v43 }
  0x68   : > { %378 = vmatpush1.msra.mxu0 %v297_v33  ;;  %950 = vmatprep.subr.mxu1 %v1274_v0  ;;  %v885_v33 = vld [vmem:[%s1547_s4] ss:$0 sm:$0xff] }
  0x69   : > { %379 = vmatprep.subr.mxu0 %v295_v35  ;;  %951 = vmatpush3.msra.mxu1 %v302_v45 }
  0x6a   : > { %380 = vmatpush1.msra.mxu0 %v294_v36  ;;  %952 = vmatprep.subr.mxu1 %v1274_v0 }
  0x6b   : > { %381 = vmatprep.subr.mxu0 %v292_v38  ;;  %953 = vmatpush3.msra.mxu1 %v299_v46 }
  0x6c   : > { %382 = vmatpush1.msra.mxu0 %v291_v39  ;;  %954 = vmatprep.subr.mxu1 %v1274_v0 }
  0x6d   : > { %383 = vmatprep.subr.mxu0 %v289_v41  ;;  %955 = vmatpush3.msra.mxu1 %v296_v47 }
  0x6e   : > { %384 = vmatpush1.msra.mxu0 %v288_v42  ;;  %956 = vmatprep.subr.mxu1 %v1274_v0 }
  0x6f   : > { %418 = vmatmul.mubr.f32.vlgmr.msra.gmra.mxu0 %v287_v44  ;;  %973 = vmatprep.subr.mxu0 %v1274_v0 }
  0x70   : > { %957 = vmatpush3.msra.mxu1 %v293_v48  ;;  %1005 = vmatprep.mubr.msk.f32.mxu0 %vm1275_vm0, %v1274_v0 }
  0x71   : > { %958 = vmatprep.subr.mxu1 %v1274_v0  ;;  %974 = vmatpush3.msra.mxu0 %v677_v12 }
  0x72   : > { %959 = vmatpush3.msra.mxu1 %v290_v49  ;;  %975 = vmatprep.subr.mxu0 %v1274_v0 }
  0x73   : > { %961 = vmatmul.mubr.f32.vlgmr.msra.gmra.mxu1 %v287_v44  ;;  %963 = vmatprep.subr.mxu1 %v1274_v0 }
  0x74   : > { %965 = vmatprep.mubr.msk.f32.mxu1 %vm1275_vm0, %v1274_v0  ;;  %976 = vmatpush3.msra.mxu0 %v676_v13 }
  0x75   : > { %977 = vmatprep.subr.mxu0 %v1274_v0 }
  0x76   : > { %978 = vmatpush3.msra.mxu0 %v675_v14 }
  0x77   : > { %979 = vmatprep.subr.mxu0 %v1274_v0 }
  0x78   : > { %980 = vmatpush3.msra.mxu0 %v674_v15 }
  0x79   : > { %981 = vmatprep.subr.mxu0 %v1274_v0 }
  0x7a   : > { %982 = vmatpush3.msra.mxu0 %v673_v16 }
  0x7b   : > { %983 = vmatprep.subr.mxu0 %v1274_v0 }
  0x7c   : > { %984 = vmatpush3.msra.mxu0 %v672_v17 }
  0x7d   : > { %985 = vmatprep.subr.mxu0 %v1274_v0 }
  0x7e   : > { %986 = vmatpush3.msra.mxu0 %v671_v18 }
  0x7f   : > { %987 = vmatprep.subr.mxu0 %v1274_v0 }
  0x80   : > { %988 = vmatpush3.msra.mxu0 %v670_v19 }
  0x81   : > { %989 = vmatprep.subr.mxu0 %v1274_v0 }
  0x82   : > { %990 = vmatpush3.msra.mxu0 %v669_v20 }
  0x83   : > { %991 = vmatprep.subr.mxu0 %v1274_v0 }
  0x84   : > { %992 = vmatpush3.msra.mxu0 %v668_v21 }
  0x85   : > { %993 = vmatprep.subr.mxu0 %v1274_v0 }
  0x86   : > { %994 = vmatpush3.msra.mxu0 %v667_v22 }
  0x87   : > { %995 = vmatprep.subr.mxu0 %v1274_v0 }
  0x88   : > { %996 = vmatpush3.msra.mxu0 %v666_v23 }
  0x89   : > { %997 = vmatprep.subr.mxu0 %v1274_v0 }
  0x8a   : > { %998 = vmatpush3.msra.mxu0 %v665_v24 }
  0x8b   : > { %999 = vmatprep.subr.mxu0 %v1274_v0 }
  0x8c   : > { %1000 = vmatpush3.msra.mxu0 %v664_v25 }
  0x8d   : > { %1001 = vmatprep.subr.mxu0 %v1274_v0 }
  0x8e   : > { %1002 = vmatpush3.msra.mxu0 %v663_v26 }
  0x8f   : > { %1003 = vmatprep.subr.mxu0 %v1274_v0 }
  0x90   : > { %1004 = vmatpush3.msra.mxu0 %v662_v27 }
 0x12f   : > { %v419_v58 = vpop.f32.mrf.mxu0 }
 0x130   : > { %v420_v62 = vadd.f32 %v419_v58, %v341_v59 }
 0x131   : > { %v421_v60 = vpop.f32.mrf.mxu0 }
 0x132   : > { %v422_v61 = vadd.f32 %v421_v60, %v345_v57 }
 0x133   : > { %v490_v63 = vpop.f32.mrf.mxu1 }
 0x134   : > { %964 = vmatpush3.xpose.msra.mxu1 %v422_v61  ;;  %v491_v1 = vadd.f32 %v490_v63, %v349_v54 }
 0x135   : > { %968 = vmatprep.subr.mxu1 %v1274_v0  ;;  %v962_v2 = vpop.f32.mrf.mxu1 }
 0x137   : > { %966 = vmatmul.mubr.f32.vlgmr.msra.gmra.mxu1 %v420_v62 }
 0x138   : > { %970 = vmatprep.mubr.msk.f32.mxu1 %vm1275_vm0, %v1274_v0  ;;  %969 = vmatpush3.msra.mxu1 %v491_v1 }
 0x1f7   : > { %v572_v3 = vpop.f32.mrf.mxu1 }
 0x1f8   : > { %v576_v4 = vmul.f32 0.17677669, %v572_v3 }
 0x1f9   : > { %v967_v5 = vpop.f32.mrf.mxu1 }
 0x1fa   : > { %v578_v6 = vsel %vm577_vm1, %v576_v4, -inf }
 0x1fb   : > { %579 = vmax.xlane.f32.xlu0 %v578_v6 }
 0x284   : > { %v580_v7 = vpop.xlane.xlu0 %579 }
 0x285   : > { %v581_v8 = vsub.f32 %v576_v4, %v580_v7 }
 0x287   : > { %v582_v9 = vmul.f32 1.442695, %v581_v8 }
 0x289   : > { %1097 = vpow2.f32 %v582_v9 }
 0x296   : > { %v1098_v10 = vpop.eup %1097 }
 0x297   : > { %971 = vmatmul.mubr.msk.f32.vlgmr.msra.gmra.mxu1 %vm577_vm1, %v1098_v10  ;;  %v584_v11 = vsel %vm577_vm1, %v1098_v10, 0.0 }
 0x298   : > { %585 = vadd.xlane.f32.xlu0 %v584_v11 }
 0x321   : > { %v586_v28 = vpop.xlane.xlu0 %585 }
 0x322   : > { %1099 = vrcp.f32 %v586_v28 }
 0x32f   : > { %v1100_v29 = vpop.eup %1099 }
 0x357   : > { %v657_v30 = vpop.f32.mrf.mxu1 }
 0x358   : > { %v661_v31 = vmul.f32 %v1100_v29, %v657_v30 }
 0x359   : > { %v972_v32 = vpop.f32.mrf.mxu1 }
 0x35a   : > { %1006 = vmatmul.mubr.f32.vlgmr.msra.gmra.mxu0 %v661_v31 }
 0x41a   : > { %v751_v0 = vpop.f32.mrf.mxu0 }
 0x41b   : > { %v752_v34 = vadd.f32 %v885_v33, %v751_v0 }
 0x41c   : > { %v1007_v35 = vpop.f32.mrf.mxu0 }
 0x41d   : > { %755 = vst [vmem:[%s282_s24] sm:$0xff] %v752_v34 }
 0x41e   : > { %1194 = shalt.err (!%p1191_p5)
}
 0x41f   : > { %s1195_s1 = scalar_lea.hbm %s1501_s8, 128  ;;  %s1199_s28 = scalar_lea.hbm %s1548_s5, 256 }
 0x420   : > { %p1196_p10 = scmp.ne.s32.totalorder %s1501_s8, %s1195_s1  ;;  %p1200_p6 = scmp.lt.s32.totalorder %s1501_s8, %s1548_s5 }
 0x421   : > { %p1201_p12 = scmp.lt.s32.totalorder %s1199_s28, %s1195_s1 }
 0x422   : > { %p1197_p1 = pnand %p1196_p10, %p1402_p7 }
 0x423   : > { %p1202_p3 = por %p1201_p12, %p1200_p6 }
 0x424   : > { %p1198_p4 = pneg %p1197_p1 }
 0x426   : > { %p1203_p8 = pnand %p1202_p3, %p1198_p4 }
 0x428   : > { %1206 = shalt.err (!%p1203_p8)
}
 0x429   : > { %1018 = dma.vmem_to_hbm [thread:$0]  (%p1402_p7), %s772_s25, 128, %s1501_s8, %s757_s9  }
 0x42a PF: > { %s783_s17 = sand.u32 1, %s1245_s18   ;;  %p1564_p9 = scmp.ne.s32.totalorder %s1556_s29, 0 }
 0x42b   : > { %p1565_p11 = scmp.ge.s32.totalorder %s1265_s23, 2  ;;  %s784_s24 = scalar_lea.sflag [#allocation5], %s783_s17 }
 0x42d   : > { %p1032_p2 = pnand %p1565_p11, %p1564_p9 }
 0x42f   : > { %p1033_p13 = pneg %p1032_p2 }
 0x431   : > { %1240 = dma.done.wait (%p1033_p13), %s784_s24, 128  }
 0x432   : > { %1242 = vsyncadd (%p1033_p13), %s784_s24, 4294967168  ;;  %s22_s23 = sadd.s32 1, %s1265_s23   ;;  %s1566_s18 = smov %s1249_s19 }
 0x433   : > { %p19_p0 = scmp.ge.s32.totalorder %s22_s23, 4   ;;  %s1567_s19 = smov %s1253_s20 }
 0x434   : > { %s1568_s20 = smov %s1411_s14  ;;  %s1569_s21 = smov %s1261_s22 }
 0x435   : > { %s1570_s22 = smov %s1572_s7  ;;  %21 = sbr.rel (!%p19_p0) target bundleno = 9 (0x9), region = 98 }
 0x43a   :  { %789 = vsyncpa [#allocation4], 1 }
 0x43b   :  { %791 = vsyncpa [#allocation4 + $0x1], 1 }
 0x43c   :  { %792 = vsyncpa [#allocation7], 1 }
 0x43d   :  { %793 = vsyncpa [#allocation5], 1 }
 0x43e   :  { %795 = vsyncpa [#allocation5 + $0x1], 1 }

</bundles_post_ra>
